<compile_context>
chip_gen: v7x
topology: tpu7x:2x2x1
jax: 0.10.0
libtpu: 0.0.40
codegen_flags: <defaults>
</compile_context>

<pallas_src>
import functools

import jax
import jax.numpy as jnp
from jax import lax
from jax.experimental import pallas as pl
from jax.experimental.pallas import tpu as pltpu


def _mish(v, exp_dtype=jnp.float32):
    # mish(x) = x * tanh(softplus(x)) = x * ((1+e^x)^2 - 1) / ((1+e^x)^2 + 1)
    # exp clamped so e^x stays finite; for x >= 20 the ratio is already 1.0.
    t = jnp.exp(jnp.minimum(v, 20.0).astype(exp_dtype)).astype(jnp.float32)
    s = (1.0 + t) * (1.0 + t)
    return v * (s - 1.0) * pl.reciprocal(s + 1.0, approx=True)


def _mlp_kernel(x_ref,
                w1_ref, b1_ref,
                w2_ref, b2_ref,
                w3_ref, b3_ref,
                w4_ref, b4_ref,
                w5_ref, b5_ref,
                o_ref,
                *, exp_dtype):
    # x tile arrives row-major (T, 12); the first dot contracts the feature axis
    # of both operands, so everything downstream is feature-major (hidden, T)
    # with the batch on the 128-wide lane axis (no host-side transpose).
    f32 = jnp.float32
    x_t = x_ref[...].astype(jnp.bfloat16)                                     # (T, 12)

    h = lax.dot_general(w1_ref[...], x_t, (((1,), (1,)), ((), ())),
                        preferred_element_type=f32) + b1_ref[...]             # (24, T)
    h = _mish(h, exp_dtype)
    # TODO(synk): Dropout(0.25) after each Mish is identity here (eval mode only).
    h = _mish(jnp.dot(w2_ref[...], h.astype(jnp.bfloat16),
                      preferred_element_type=f32) + b2_ref[...], exp_dtype)    # (48, T)
    h = _mish(jnp.dot(w3_ref[...], h.astype(jnp.bfloat16),
                      preferred_element_type=f32) + b3_ref[...], exp_dtype)    # (24, T)
    h = _mish(jnp.dot(w4_ref[...], h.astype(jnp.bfloat16),
                      preferred_element_type=f32) + b4_ref[...], exp_dtype)    # (24, T)

    out = jnp.dot(w5_ref[...], h.astype(jnp.bfloat16),
                  preferred_element_type=f32) + b5_ref[...]                    # (1, T)
    o_ref[...] = out.astype(o_ref.dtype)                                       # lane-dense store


def _round_up(v, m):
    return (v + m - 1) // m * m


def _device_kind():
    try:
        return jax.devices()[0].device_kind.lower()
    except Exception:
        return ""


@functools.partial(jax.jit, static_argnames=("block_rows",))
def others_features12_nn(x, params, block_rows=4096):
    """x: (N, 12) row-major float32 (bf16 also accepted; f32 accumulation inside).
    params: PyTorch-layout weights (out_f, in_f) and biases (out_f, 1)."""
    n, f = x.shape
    kind = _device_kind()

    # ---- batch tile ---------------------------------------------------------
    # Per-grid-step overhead is ~600 cycles, so use big tiles (multiple of 128
    # lanes) and a single step when the whole batch fits one tile.  Only v7x
    # (2 TensorCores) benefits from forcing >=2 "parallel" steps, and only when
    # each half is still a >=2048-row tile.
    n128 = _round_up(max(n, 1), 128)
    block = min(max(128, _round_up(block_rows, 128)), n128)
    if "v7" in kind and n128 >= 2 * 2048 and pl.cdiv(n128, block) < 2:
        block = _round_up(pl.cdiv(n128, 2), 128)
    padded_n = _round_up(n, block)
    grid = (padded_n // block,)

    # Row-major input straight from the caller; pad rows only when needed.
    x_in = x if padded_n == n else jnp.pad(x, ((0, padded_n - n), (0, 0)))

    # Weights go in as bf16 -> guaranteed single-pass MXU dots (f32 accumulate).
    ws = [params[f"w{i}"].astype(jnp.bfloat16) for i in range(1, 6)]
    bs = [params[f"b{i}"].astype(jnp.float32) for i in range(1, 6)]

    def full_spec(arr):
        # Tiny constant operands (<10 KiB total); constant block index keeps
        # them resident in VMEM across all grid steps.
        return pl.BlockSpec(arr.shape, lambda i: (0, 0))

    in_specs = [pl.BlockSpec((block, f), lambda i: (i, 0))]       # x tile (T, 12)
    flat_params = []
    for w, b in zip(ws, bs):
        flat_params += [w, b]
        in_specs += [full_spec(w), full_spec(b)]

    # bf16 exp only on chips with a bf16 EUP (v6e / v7x); f32 on v5e and older.
    use_bf16_exp = not any(t in kind for t in ("v2", "v3", "v4", "v5"))
    kernel = functools.partial(
        _mlp_kernel, exp_dtype=jnp.bfloat16 if use_bf16_exp else jnp.float32)

    out_t = pl.pallas_call(
        kernel,
        out_shape=jax.ShapeDtypeStruct((1, padded_n), jnp.float32),
        grid_spec=pltpu.PrefetchScalarGridSpec(
            num_scalar_prefetch=0,
            grid=grid,
            in_specs=in_specs,
            out_specs=pl.BlockSpec((1, block), lambda i: (0, i)),  # lane-dense store
        ),
        compiler_params=pltpu.CompilerParams(
            dimension_semantics=("parallel",),
        ),
    )(x_in, *flat_params)

    return out_t[:, :n].T                                          # (N, 1)


def _xavier_uniform(key, out_f, in_f):
    # torch.nn.init.xavier_uniform_ on a (out_f, in_f) weight (PyTorch layout).
    limit = jnp.sqrt(6.0 / (in_f + out_f))
    return jax.random.uniform(key, (out_f, in_f), jnp.float32, -limit, limit)


def init_params(key, in_features=12):
    dims = [(in_features, 24), (24, 48), (48, 24), (24, 24)]
    keys = jax.random.split(key, len(dims) + 2)
    params = {}
    for idx, (fi, fo) in enumerate(dims, start=1):
        params[f"w{idx}"] = _xavier_uniform(keys[idx - 1], fo, fi)
        params[f"b{idx}"] = jnp.zeros((fo, 1), jnp.float32)
    # output layer: torch default (kaiming-uniform-ish); deterministic uniform here
    lim = 1.0 / jnp.sqrt(24.0)
    params["w5"] = jax.random.uniform(keys[4], (1, 24), jnp.float32, -lim, lim)
    params["b5"] = jax.random.uniform(keys[5], (1, 1), jnp.float32, -lim, lim)
    return params


def _reference(x, p):
    # pure-JAX reference (exact mish, f32 matmuls) for sanity checking.
    h = x
    for i in range(1, 5):
        h = h @ p[f"w{i}"].T + p[f"b{i}"].T
        h = h * jnp.tanh(jax.nn.softplus(h))
    return h @ p["w5"].T + p["b5"].T


if __name__ == "__main__":
    key = jax.random.PRNGKey(0)
    k_x, k_p = jax.random.split(key)

    in_features = 12
    params = init_params(k_p, in_features)

    # Tolerance covers the deliberate bf16 MXU operands + approx EUP reciprocal
    # (per-layer ~1e-3 relative on ~0.1-1 magnitude activations); real bugs
    # would be orders of magnitude larger.
    ATOL = RTOL = 1e-2

    # Small single-tile case (exercises row padding 16 -> 128).
    x_small = jax.random.normal(k_x, (16, in_features), jnp.float32)
    out_small = jax.block_until_ready(others_features12_nn(x_small, params))
    ref_small = _reference(x_small, params)
    assert out_small.shape == (16, 1)
    assert jnp.allclose(out_small, ref_small, atol=ATOL, rtol=RTOL), "mismatch (small)"

    # Multi-step grid with a batch not divisible by the tile size.
    x_big = jax.random.normal(k_x, (300, in_features), jnp.float32)
    out_big = jax.block_until_ready(others_features12_nn(x_big, params, block_rows=128))
    ref_big = _reference(x_big, params)
    assert out_big.shape == (300, 1)
    assert jnp.allclose(out_big, ref_big, atol=ATOL, rtol=RTOL), "mismatch (multi-tile)"

    # Default (large-tile, single-step) path.
    x_mid = jax.random.normal(k_x, (1000, in_features), jnp.float32)
    out_mid = jax.block_until_ready(others_features12_nn(x_mid, params))
    ref_mid = _reference(x_mid, params)
    assert out_mid.shape == (1000, 1)
    assert jnp.allclose(out_mid, ref_mid, atol=ATOL, rtol=RTOL), "mismatch (default)"

    print("KERNEL_OK")
</pallas_src>

<mosaic_0001>
module attributes {stable_mosaic.version = 11 : i64} {
  func.func @_mlp_kernel(%arg0: i32, %arg1: memref<128x12xf32, #tpu.memory_space<vmem>>, %arg2: memref<24x12xbf16, #tpu.memory_space<vmem>>, %arg3: memref<24x1xf32, #tpu.memory_space<vmem>>, %arg4: memref<48x24xbf16, #tpu.memory_space<vmem>>, %arg5: memref<48x1xf32, #tpu.memory_space<vmem>>, %arg6: memref<24x48xbf16, #tpu.memory_space<vmem>>, %arg7: memref<24x1xf32, #tpu.memory_space<vmem>>, %arg8: memref<24x24xbf16, #tpu.memory_space<vmem>>, %arg9: memref<24x1xf32, #tpu.memory_space<vmem>>, %arg10: memref<1x24xbf16, #tpu.memory_space<vmem>>, %arg11: memref<1x1xf32, #tpu.memory_space<vmem>>, %arg12: memref<1x128xf32, #tpu.memory_space<vmem>>) attributes {dimension_semantics = [#tpu.dimension_semantics<parallel>], iteration_bounds = array<i64: 1>, scalar_prefetch = 0 : i64, scratch_operands = 0 : i64, tpu.core_type = #tpu.core_type<tc>, window_params = [{transform_indices = @transform_0, window_bounds = array<i64: 128, 12>}, {pipeline_mode = #tpu.pipeline_mode<synchronous>, transform_indices = @transform_1, window_bounds = array<i64: 24, 12>}, {pipeline_mode = #tpu.pipeline_mode<synchronous>, transform_indices = @transform_2, window_bounds = array<i64: 24, 1>}, {pipeline_mode = #tpu.pipeline_mode<synchronous>, transform_indices = @transform_3, window_bounds = array<i64: 48, 24>}, {pipeline_mode = #tpu.pipeline_mode<synchronous>, transform_indices = @transform_4, window_bounds = array<i64: 48, 1>}, {pipeline_mode = #tpu.pipeline_mode<synchronous>, transform_indices = @transform_5, window_bounds = array<i64: 24, 48>}, {pipeline_mode = #tpu.pipeline_mode<synchronous>, transform_indices = @transform_6, window_bounds = array<i64: 24, 1>}, {pipeline_mode = #tpu.pipeline_mode<synchronous>, transform_indices = @transform_7, window_bounds = array<i64: 24, 24>}, {pipeline_mode = #tpu.pipeline_mode<synchronous>, transform_indices = @transform_8, window_bounds = array<i64: 24, 1>}, {pipeline_mode = #tpu.pipeline_mode<synchronous>, transform_indices = @transform_9, window_bounds = array<i64: 1, 24>}, {pipeline_mode = #tpu.pipeline_mode<synchronous>, transform_indices = @transform_10, window_bounds = array<i64: 1, 1>}, {transform_indices = @transform_11, window_bounds = array<i64: 1, 128>}]} {
    %c0 = arith.constant 0 : index
    %c0_0 = arith.constant 0 : index
    %0 = vector.load %arg1[%c0, %c0_0] : memref<128x12xf32, #tpu.memory_space<vmem>>, vector<128x12xf32>
    %1 = arith.truncf %0 : vector<128x12xf32> to vector<128x12xbf16>
    %c0_1 = arith.constant 0 : index
    %c0_2 = arith.constant 0 : index
    %2 = vector.load %arg2[%c0_1, %c0_2] : memref<24x12xbf16, #tpu.memory_space<vmem>>, vector<24x12xbf16>
    %cst = arith.constant dense<0.000000e+00> : vector<24x128xf32>
    %3 = tpu.matmul %2, %1, %cst {dimension_numbers = #tpu.dot_dimension_numbers<[1], [1], [0], [0], [0, 0, 1, 0], [], []>} : vector<24x12xbf16>, vector<128x12xbf16>, vector<24x128xf32> -> vector<24x128xf32>
    %c0_3 = arith.constant 0 : index
    %c0_4 = arith.constant 0 : index
    %4 = vector.load %arg3[%c0_3, %c0_4] : memref<24x1xf32, #tpu.memory_space<vmem>>, vector<24x1xf32>
    %5 = vector.broadcast %4 : vector<24x1xf32> to vector<24x128xf32>
    %6 = arith.addf %3, %5 : vector<24x128xf32>
    %cst_5 = arith.constant 2.000000e+01 : f32
    %7 = vector.broadcast %cst_5 : f32 to vector<24x128xf32>
    %8 = arith.minimumf %6, %7 : vector<24x128xf32>
    %9 = arith.truncf %8 : vector<24x128xf32> to vector<24x128xbf16>
    %10 = math.exp %9 : vector<24x128xbf16>
    %11 = arith.extf %10 : vector<24x128xbf16> to vector<24x128xf32>
    %cst_6 = arith.constant 1.000000e+00 : f32
    %12 = vector.broadcast %cst_6 : f32 to vector<24x128xf32>
    %13 = arith.addf %12, %11 : vector<24x128xf32>
    %cst_7 = arith.constant 1.000000e+00 : f32
    %14 = vector.broadcast %cst_7 : f32 to vector<24x128xf32>
    %15 = arith.addf %14, %11 : vector<24x128xf32>
    %16 = arith.mulf %13, %15 : vector<24x128xf32>
    %cst_8 = arith.constant 1.000000e+00 : f32
    %17 = vector.broadcast %cst_8 : f32 to vector<24x128xf32>
    %18 = arith.subf %16, %17 : vector<24x128xf32>
    %19 = arith.mulf %6, %18 : vector<24x128xf32>
    %cst_9 = arith.constant 1.000000e+00 : f32
    %20 = vector.broadcast %cst_9 : f32 to vector<24x128xf32>
    %21 = arith.addf %16, %20 : vector<24x128xf32>
    %22 = tpu.reciprocal %21 {approx = true} : vector<24x128xf32> -> vector<24x128xf32>
    %23 = arith.mulf %19, %22 : vector<24x128xf32>
    %c0_10 = arith.constant 0 : index
    %c0_11 = arith.constant 0 : index
    %24 = vector.load %arg4[%c0_10, %c0_11] : memref<48x24xbf16, #tpu.memory_space<vmem>>, vector<48x24xbf16>
    %25 = arith.truncf %23 : vector<24x128xf32> to vector<24x128xbf16>
    %cst_12 = arith.constant dense<0.000000e+00> : vector<48x128xf32>
    %26 = tpu.matmul %24, %25, %cst_12 {dimension_numbers = #tpu.dot_dimension_numbers<[1], [0], [0], [1], [0, 0, 1, 1], [], []>} : vector<48x24xbf16>, vector<24x128xbf16>, vector<48x128xf32> -> vector<48x128xf32>
    %c0_13 = arith.constant 0 : index
    %c0_14 = arith.constant 0 : index
    %27 = vector.load %arg5[%c0_13, %c0_14] : memref<48x1xf32, #tpu.memory_space<vmem>>, vector<48x1xf32>
    %28 = vector.broadcast %27 : vector<48x1xf32> to vector<48x128xf32>
    %29 = arith.addf %26, %28 : vector<48x128xf32>
    %cst_15 = arith.constant 2.000000e+01 : f32
    %30 = vector.broadcast %cst_15 : f32 to vector<48x128xf32>
    %31 = arith.minimumf %29, %30 : vector<48x128xf32>
    %32 = arith.truncf %31 : vector<48x128xf32> to vector<48x128xbf16>
    %33 = math.exp %32 : vector<48x128xbf16>
    %34 = arith.extf %33 : vector<48x128xbf16> to vector<48x128xf32>
    %cst_16 = arith.constant 1.000000e+00 : f32
    %35 = vector.broadcast %cst_16 : f32 to vector<48x128xf32>
    %36 = arith.addf %35, %34 : vector<48x128xf32>
    %cst_17 = arith.constant 1.000000e+00 : f32
    %37 = vector.broadcast %cst_17 : f32 to vector<48x128xf32>
    %38 = arith.addf %37, %34 : vector<48x128xf32>
    %39 = arith.mulf %36, %38 : vector<48x128xf32>
    %cst_18 = arith.constant 1.000000e+00 : f32
    %40 = vector.broadcast %cst_18 : f32 to vector<48x128xf32>
    %41 = arith.subf %39, %40 : vector<48x128xf32>
    %42 = arith.mulf %29, %41 : vector<48x128xf32>
    %cst_19 = arith.constant 1.000000e+00 : f32
    %43 = vector.broadcast %cst_19 : f32 to vector<48x128xf32>
    %44 = arith.addf %39, %43 : vector<48x128xf32>
    %45 = tpu.reciprocal %44 {approx = true} : vector<48x128xf32> -> vector<48x128xf32>
    %46 = arith.mulf %42, %45 : vector<48x128xf32>
    %c0_20 = arith.constant 0 : index
    %c0_21 = arith.constant 0 : index
    %47 = vector.load %arg6[%c0_20, %c0_21] : memref<24x48xbf16, #tpu.memory_space<vmem>>, vector<24x48xbf16>
    %48 = arith.truncf %46 : vector<48x128xf32> to vector<48x128xbf16>
    %cst_22 = arith.constant dense<0.000000e+00> : vector<24x128xf32>
    %49 = tpu.matmul %47, %48, %cst_22 {dimension_numbers = #tpu.dot_dimension_numbers<[1], [0], [0], [1], [0, 0, 1, 1], [], []>} : vector<24x48xbf16>, vector<48x128xbf16>, vector<24x128xf32> -> vector<24x128xf32>
    %c0_23 = arith.constant 0 : index
    %c0_24 = arith.constant 0 : index
    %50 = vector.load %arg7[%c0_23, %c0_24] : memref<24x1xf32, #tpu.memory_space<vmem>>, vector<24x1xf32>
    %51 = vector.broadcast %50 : vector<24x1xf32> to vector<24x128xf32>
    %52 = arith.addf %49, %51 : vector<24x128xf32>
    %cst_25 = arith.constant 2.000000e+01 : f32
    %53 = vector.broadcast %cst_25 : f32 to vector<24x128xf32>
    %54 = arith.minimumf %52, %53 : vector<24x128xf32>
    %55 = arith.truncf %54 : vector<24x128xf32> to vector<24x128xbf16>
    %56 = math.exp %55 : vector<24x128xbf16>
    %57 = arith.extf %56 : vector<24x128xbf16> to vector<24x128xf32>
    %cst_26 = arith.constant 1.000000e+00 : f32
    %58 = vector.broadcast %cst_26 : f32 to vector<24x128xf32>
    %59 = arith.addf %58, %57 : vector<24x128xf32>
    %cst_27 = arith.constant 1.000000e+00 : f32
    %60 = vector.broadcast %cst_27 : f32 to vector<24x128xf32>
    %61 = arith.addf %60, %57 : vector<24x128xf32>
    %62 = arith.mulf %59, %61 : vector<24x128xf32>
    %cst_28 = arith.constant 1.000000e+00 : f32
    %63 = vector.broadcast %cst_28 : f32 to vector<24x128xf32>
    %64 = arith.subf %62, %63 : vector<24x128xf32>
    %65 = arith.mulf %52, %64 : vector<24x128xf32>
    %cst_29 = arith.constant 1.000000e+00 : f32
    %66 = vector.broadcast %cst_29 : f32 to vector<24x128xf32>
    %67 = arith.addf %62, %66 : vector<24x128xf32>
    %68 = tpu.reciprocal %67 {approx = true} : vector<24x128xf32> -> vector<24x128xf32>
    %69 = arith.mulf %65, %68 : vector<24x128xf32>
    %c0_30 = arith.constant 0 : index
    %c0_31 = arith.constant 0 : index
    %70 = vector.load %arg8[%c0_30, %c0_31] : memref<24x24xbf16, #tpu.memory_space<vmem>>, vector<24x24xbf16>
    %71 = arith.truncf %69 : vector<24x128xf32> to vector<24x128xbf16>
    %cst_32 = arith.constant dense<0.000000e+00> : vector<24x128xf32>
    %72 = tpu.matmul %70, %71, %cst_32 {dimension_numbers = #tpu.dot_dimension_numbers<[1], [0], [0], [1], [0, 0, 1, 1], [], []>} : vector<24x24xbf16>, vector<24x128xbf16>, vector<24x128xf32> -> vector<24x128xf32>
    %c0_33 = arith.constant 0 : index
    %c0_34 = arith.constant 0 : index
    %73 = vector.load %arg9[%c0_33, %c0_34] : memref<24x1xf32, #tpu.memory_space<vmem>>, vector<24x1xf32>
    %74 = vector.broadcast %73 : vector<24x1xf32> to vector<24x128xf32>
    %75 = arith.addf %72, %74 : vector<24x128xf32>
    %cst_35 = arith.constant 2.000000e+01 : f32
    %76 = vector.broadcast %cst_35 : f32 to vector<24x128xf32>
    %77 = arith.minimumf %75, %76 : vector<24x128xf32>
    %78 = arith.truncf %77 : vector<24x128xf32> to vector<24x128xbf16>
    %79 = math.exp %78 : vector<24x128xbf16>
    %80 = arith.extf %79 : vector<24x128xbf16> to vector<24x128xf32>
    %cst_36 = arith.constant 1.000000e+00 : f32
    %81 = vector.broadcast %cst_36 : f32 to vector<24x128xf32>
    %82 = arith.addf %81, %80 : vector<24x128xf32>
    %cst_37 = arith.constant 1.000000e+00 : f32
    %83 = vector.broadcast %cst_37 : f32 to vector<24x128xf32>
    %84 = arith.addf %83, %80 : vector<24x128xf32>
    %85 = arith.mulf %82, %84 : vector<24x128xf32>
    %cst_38 = arith.constant 1.000000e+00 : f32
    %86 = vector.broadcast %cst_38 : f32 to vector<24x128xf32>
    %87 = arith.subf %85, %86 : vector<24x128xf32>
    %88 = arith.mulf %75, %87 : vector<24x128xf32>
    %cst_39 = arith.constant 1.000000e+00 : f32
    %89 = vector.broadcast %cst_39 : f32 to vector<24x128xf32>
    %90 = arith.addf %85, %89 : vector<24x128xf32>
    %91 = tpu.reciprocal %90 {approx = true} : vector<24x128xf32> -> vector<24x128xf32>
    %92 = arith.mulf %88, %91 : vector<24x128xf32>
    %c0_40 = arith.constant 0 : index
    %c0_41 = arith.constant 0 : index
    %93 = vector.load %arg10[%c0_40, %c0_41] : memref<1x24xbf16, #tpu.memory_space<vmem>>, vector<1x24xbf16>
    %94 = arith.truncf %92 : vector<24x128xf32> to vector<24x128xbf16>
    %cst_42 = arith.constant dense<0.000000e+00> : vector<1x128xf32>
    %95 = tpu.matmul %93, %94, %cst_42 {dimension_numbers = #tpu.dot_dimension_numbers<[1], [0], [0], [1], [0, 0, 1, 1], [], []>} : vector<1x24xbf16>, vector<24x128xbf16>, vector<1x128xf32> -> vector<1x128xf32>
    %c0_43 = arith.constant 0 : index
    %c0_44 = arith.constant 0 : index
    %96 = vector.load %arg11[%c0_43, %c0_44] : memref<1x1xf32, #tpu.memory_space<vmem>>, vector<1x1xf32>
    %97 = vector.broadcast %96 : vector<1x1xf32> to vector<1x128xf32>
    %98 = arith.addf %95, %97 : vector<1x128xf32>
    %c0_45 = arith.constant 0 : index
    %c0_46 = arith.constant 0 : index
    %99 = vector.load %arg12[%c0_45, %c0_46] : memref<1x128xf32, #tpu.memory_space<vmem>>, vector<1x128xf32>
    tpu.vector_store %arg12[%c0_45, %c0_46], %98 {strides = array<i32>} : memref<1x128xf32, #tpu.memory_space<vmem>>, vector<1x128xf32>,
    return
  }
  func.func @transform_0(%arg0: i32) -> (i32, i32) {
    %c0_i32 = arith.constant 0 : i32
    %c0_i32_0 = arith.constant 0 : i32
    return %arg0, %c0_i32 : i32, i32
  }
  func.func @transform_1(%arg0: i32) -> (i32, i32) {
    %c0_i32 = arith.constant 0 : i32
    %c0_i32_0 = arith.constant 0 : i32
    %c0_i32_1 = arith.constant 0 : i32
    return %c0_i32, %c0_i32_0 : i32, i32
  }
  func.func @transform_2(%arg0: i32) -> (i32, i32) {
    %c0_i32 = arith.constant 0 : i32
    %c0_i32_0 = arith.constant 0 : i32
    %c0_i32_1 = arith.constant 0 : i32
    return %c0_i32, %c0_i32_0 : i32, i32
  }
  func.func @transform_3(%arg0: i32) -> (i32, i32) {
    %c0_i32 = arith.constant 0 : i32
    %c0_i32_0 = arith.constant 0 : i32
    %c0_i32_1 = arith.constant 0 : i32
    return %c0_i32, %c0_i32_0 : i32, i32
  }
  func.func @transform_4(%arg0: i32) -> (i32, i32) {
    %c0_i32 = arith.constant 0 : i32
    %c0_i32_0 = arith.constant 0 : i32
    %c0_i32_1 = arith.constant 0 : i32
    return %c0_i32, %c0_i32_0 : i32, i32
  }
  func.func @transform_5(%arg0: i32) -> (i32, i32) {
    %c0_i32 = arith.constant 0 : i32
    %c0_i32_0 = arith.constant 0 : i32
    %c0_i32_1 = arith.constant 0 : i32
    return %c0_i32, %c0_i32_0 : i32, i32
  }
  func.func @transform_6(%arg0: i32) -> (i32, i32) {
    %c0_i32 = arith.constant 0 : i32
    %c0_i32_0 = arith.constant 0 : i32
    %c0_i32_1 = arith.constant 0 : i32
    return %c0_i32, %c0_i32_0 : i32, i32
  }
  func.func @transform_7(%arg0: i32) -> (i32, i32) {
    %c0_i32 = arith.constant 0 : i32
    %c0_i32_0 = arith.constant 0 : i32
    %c0_i32_1 = arith.constant 0 : i32
    return %c0_i32, %c0_i32_0 : i32, i32
  }
  func.func @transform_8(%arg0: i32) -> (i32, i32) {
    %c0_i32 = arith.constant 0 : i32
    %c0_i32_0 = arith.constant 0 : i32
    %c0_i32_1 = arith.constant 0 : i32
    return %c0_i32, %c0_i32_0 : i32, i32
  }
  func.func @transform_9(%arg0: i32) -> (i32, i32) {
    %c0_i32 = arith.constant 0 : i32
    %c0_i32_0 = arith.constant 0 : i32
    %c0_i32_1 = arith.constant 0 : i32
    return %c0_i32, %c0_i32_0 : i32, i32
  }
  func.func @transform_10(%arg0: i32) -> (i32, i32) {
    %c0_i32 = arith.constant 0 : i32
    %c0_i32_0 = arith.constant 0 : i32
    %c0_i32_1 = arith.constant 0 : i32
    return %c0_i32, %c0_i32_0 : i32, i32
  }
  func.func @transform_11(%arg0: i32) -> (i32, i32) {
    %c0_i32 = arith.constant 0 : i32
    %c0_i32_0 = arith.constant 0 : i32
    return %c0_i32, %arg0 : i32, i32
  }
}

</mosaic_0001>

<bundles_post_ra>
// kernel: others_features12_nn.1
= control target key start
LH: loop header
LB: loop body
LE: loop exit
PB: predicated region body
PF: predicated region fallthrough
CT: control target
= control target key end

     0   :  { %vm94_vm0 = vcmask 97280   ;;  %v907_v3 = vmov 0   ;;  %v908_v52 = vmov 0.0   ;;  %vm909_vm1 = vmmov 0   ;;  %s1141_s0 = inlined_call_operand.vmem [shape: f32[128,12], index: 0, kind: input, shape index: {}]   ;;  %s1142_s10 = inlined_call_operand.<no memory space> [shape: f32[1,1], index: 10, kind: input, shape index: {}]   ;;  %s1143_s1 = inlined_call_operand.vmem [shape: bf16[24,12], index: 1, kind: input, shape index: {}]   ;;  %s1144_s2 = inlined_call_operand.vmem [shape: f32[24,1], index: 2, kind: input, shape index: {}]   ;;  %s1145_s4 = inlined_call_operand.vmem [shape: f32[48,1], index: 4, kind: input, shape index: {}]   ;;  %s1146_s6 = inlined_call_operand.vmem [shape: f32[24,1], index: 6, kind: input, shape index: {}]   ;;  %s1147_s8 = inlined_call_operand.vmem [shape: f32[24,1], index: 8, kind: input, shape index: {}]   ;;  %s1148_s3 = inlined_call_operand.vmem [shape: bf16[48,24], index: 3, kind: input, shape index: {}]   ;;  %s1149_s5 = inlined_call_operand.vmem [shape: bf16[24,48], index: 5, kind: input, shape index: {}]   ;;  %s1150_s7 = inlined_call_operand.vmem [shape: bf16[24,24], index: 7, kind: input, shape index: {}]   ;;  %s1151_s9 = inlined_call_operand.vmem [shape: bf16[1,24], index: 9, kind: input, shape index: {}]   ;;  %s1152_s11 = inlined_call_operand.vmem [shape: f32[1,128], index: 11, kind: output, shape index: {}]  }
   0x1   :  { %v41_v0 = vld [vmem:[%s1141_s0] sm:$0xff]  ;;  %v42_v1 = vld [vmem:[%s1141_s0 + $0x8] sm:$0xff]  ;;  %v43_v2 = vld [vmem:[%s1141_s0 + $0x10] sm:$0xff]  ;;  %848 = vset.pattern.permute.xlu0 %v907_v3  ;;  %849 = vset.pattern.permute.xlu1 %v907_v3  ;;  %v16_v4 = vstv %s1142_s10  ;;  %vm277_vm2 = vcmask 1043456   ;;  %vm267_vm3 = vcmask 195584   ;;  %vm436_vm4 = vcmask 392192  }
   0x2   :  { %v57_v5 = vpack.c.bf16 %v42_v1, %v41_v0  ;;  %v44_v6 = vld [vmem:[%s1141_s0 + $0x18] sm:$0xff]  ;;  %17 = vst [vmem:[#allocation2] sm:$0x1] %v16_v4  ;;  %v45_v9 = vld [vmem:[%s1141_s0 + $0x20] sm:$0xff]  ;;  %v46_v10 = vld [vmem:[%s1141_s0 + $0x28] sm:$0xff]  ;;  %794 = vmatprep.subr.bf16.mxu1 %v908_v52  ;;  %798 = vmatprep.mubr.msk.bf16.mxu1 %vm909_vm1, %v908_v52 }
   0x3   :  { %v58_v7 = vpack.c.bf16 %v44_v6, %v43_v2  ;;  %v850_v11 = vld [vmem:[%s1143_s1] sm:$0xff]   ;;  %v70_v13 = vld [vmem:[%s1144_s2 + $0x10] sm:$0xff]  ;;  %v69_v14 = vld [vmem:[%s1144_s2 + $0x8] sm:$0xff]  ;;  %v59_v16 = vpack.c.bf16 %v46_v10, %v45_v9 }
   0x4   :  { %836 = vmatprep.subr.msk.bf16.mxu0 %vm94_vm0, %v57_v5  ;;  %v102_v8 = vsel %vm94_vm0, %v57_v5, 0  ;;  %v68_v12 = vld [vmem:[%s1144_s2] sm:$0xff]  ;;  %790 = vmatprep.mubr.msk.bf16.mxu0 %vm94_vm0, %v850_v11  ;;  %v217_v18 = vld [vmem:[%s1145_s4 + $0x8] sm:$0xff]  ;;  %v218_v19 = vld [vmem:[%s1145_s4 + $0x10] sm:$0xff] }
   0x5   :  { %775 = vmatpush3.bf16.xpose.msra.mxu0 %v102_v8  ;;  %73 = vperm.xlu0 %848, %v68_v12   ;;  %v105_v15 = vsel %vm94_vm0, %v58_v7, 0  ;;  %v216_v17 = vld [vmem:[%s1145_s4] sm:$0xff]  ;;  %v47_v20 = vld [vmem:[%s1141_s0 + $0x30] sm:$0xff]  ;;  %v48_v21 = vld [vmem:[%s1141_s0 + $0x38] sm:$0xff]  ;;  %v108_v23 = vsel %vm94_vm0, %v59_v16, 0 }
   0x6   :  { %837 = vmatprep.subr.msk.bf16.mxu0 %vm94_vm0, %v58_v7  ;;  %83 = vperm.xlu1 %849, %v70_v13   ;;  %v219_v22 = vld [vmem:[%s1145_s4 + $0x18] sm:$0xff]  ;;  %v60_v24 = vpack.c.bf16 %v48_v21, %v47_v20  ;;  %v220_v25 = vld [vmem:[%s1145_s4 + $0x20] sm:$0xff]  ;;  %v221_v26 = vld [vmem:[%s1145_s4 + $0x28] sm:$0xff] }
   0x7   :  { %v410_v27 = vld [vmem:[%s1146_s6] sm:$0xff]  ;;  %v50_v29 = vld [vmem:[%s1141_s0 + $0x48] sm:$0xff]  ;;  %v412_v33 = vld [vmem:[%s1146_s6 + $0x10] sm:$0xff] }
   0x8   :  { %v49_v28 = vld [vmem:[%s1141_s0 + $0x40] sm:$0xff]  ;;  %v411_v30 = vld [vmem:[%s1146_s6 + $0x8] sm:$0xff]  ;;  %v111_v31 = vsel %vm94_vm0, %v60_v24, 0  ;;  %v51_v36 = vld [vmem:[%s1141_s0 + $0x50] sm:$0xff] }
   0x9   :  { %78 = vperm.xlu0 %848, %v69_v14   ;;  %v61_v32 = vpack.c.bf16 %v50_v29, %v49_v28  ;;  %v531_v34 = vld [vmem:[%s1147_s8] sm:$0xff]  ;;  %v532_v35 = vld [vmem:[%s1147_s8 + $0x8] sm:$0xff]  ;;  %v52_v37 = vld [vmem:[%s1141_s0 + $0x58] sm:$0xff] }
   0xa   :  { %224 = vperm.xlu1 %849, %v216_v17   ;;  %v533_v38 = vld [vmem:[%s1147_s8 + $0x10] sm:$0xff]  ;;  %v62_v40 = vpack.c.bf16 %v52_v37, %v51_v36  ;;  %v652_v41 = vld [vmem:[#allocation2] sm:$0x1]  ;;  %v54_v43 = vld [vmem:[%s1141_s0 + $0x68] sm:$0xff] }
   0xb   :  { %v114_v39 = vsel %vm94_vm0, %v61_v32, 0  ;;  %v53_v42 = vld [vmem:[%s1141_s0 + $0x60] sm:$0xff]  ;;  %v55_v46 = vld [vmem:[%s1141_s0 + $0x70] sm:$0xff]  ;;  %v56_v47 = vld [vmem:[%s1141_s0 + $0x78] sm:$0xff] }
   0xc   :  { %v117_v44 = vsel %vm94_vm0, %v62_v40, 0  ;;  %v63_v45 = vpack.c.bf16 %v54_v43, %v53_v42  ;;  %v64_v49 = vpack.c.bf16 %v56_v47, %v55_v46  ;;  %v851_v51 = vld [vmem:[%s1143_s1 + $0x8] ss:$0 sps:$4 sm:$0xff]   ;;  %v854_v37 = vld [vmem:[%s1148_s3 + $0x10] sm:$0xff]  }
   0xd   :  { %777 = vmatpush3.bf16.xpose.msra.mxu0 %v105_v15  ;;  %229 = vperm.xlu0 %848, %v217_v18   ;;  %v853_v36 = vld [vmem:[%s1148_s3 + $0x8] sm:$0xff]  }
   0xe   :  { %838 = vmatprep.subr.msk.bf16.mxu0 %vm94_vm0, %v59_v16  ;;  %234 = vperm.xlu1 %849, %v218_v19   ;;  %v120_v48 = vsel %vm94_vm0, %v63_v45, 0  ;;  %v123_v50 = vsel %vm94_vm0, %v64_v49, 0 }
  0x11   :  { %239 = vperm.xlu0 %848, %v219_v22  }
  0x12   :  { %244 = vperm.xlu1 %849, %v220_v25  }
  0x15   :  { %779 = vmatpush3.bf16.xpose.msra.mxu0 %v108_v23  ;;  %249 = vperm.xlu0 %848, %v221_v26  }
  0x16   :  { %839 = vmatprep.subr.msk.bf16.mxu0 %vm94_vm0, %v60_v24  ;;  %415 = vperm.xlu1 %849, %v410_v27  }
  0x19   :  { %420 = vperm.xlu0 %848, %v411_v30  }
  0x1a   :  { %425 = vperm.xlu1 %849, %v412_v33  }
  0x1d   :  { %781 = vmatpush3.bf16.xpose.msra.mxu0 %v111_v31  ;;  %536 = vperm.xlu0 %848, %v531_v34  }
  0x1e   :  { %840 = vmatprep.subr.msk.bf16.mxu0 %vm94_vm0, %v61_v32  ;;  %541 = vperm.xlu1 %849, %v532_v35   ;;  %v852_v35 = vld [vmem:[%s1148_s3] sm:$0xff]  }
  0x21   :  { %546 = vperm.xlu0 %848, %v533_v38   ;;  %v855_v38 = vld [vmem:[%s1149_s5] sm:$0xff]  }
  0x22   :  { %655 = vperm.xlu1 %849, %v652_v41  }
  0x25   :  { %783 = vmatpush3.bf16.xpose.msra.mxu0 %v114_v39 }
  0x26   :  { %841 = vmatprep.subr.msk.bf16.mxu0 %vm94_vm0, %v62_v40 }
  0x2d   :  { %785 = vmatpush3.bf16.xpose.msra.mxu0 %v117_v44 }
  0x2e   :  { %842 = vmatprep.subr.msk.bf16.mxu0 %vm94_vm0, %v63_v45 }
  0x35   :  { %787 = vmatpush3.bf16.xpose.msra.mxu0 %v120_v48 }
  0x36   :  { %843 = vmatprep.subr.msk.bf16.mxu0 %vm94_vm0, %v64_v49 }
  0x3d   :  { %789 = vmatpush3.bf16.xpose.msra.mxu0 %v123_v50 }
  0x44   :  { %791 = vmatmul.mubr.msk.bf16.vlgmr.msra.gmra.mrb[0].mxu0 %vm94_vm0, %v851_v51 }
  0x84   :  { %v74_v53 = vpop.permute.xlu0 %73 }
  0x85   :  { %v84_v54 = vpop.permute.xlu1 %83 }
  0x88   :  { %v79_v60 = vpop.permute.xlu0 %78 }
  0x89   :  { %v225_v39 = vpop.permute.xlu1 %224 }
  0x8c   :  { %v230_v43 = vpop.permute.xlu0 %229 }
  0x8d   :  { %v235_v50 = vpop.permute.xlu1 %234 }
 0x117   :  { %v792_v55 = vpop.f32.mrb[0].mxu0 }
 0x118   :  { %v168_v56 = vadd.f32 %v792_v55, %v84_v54  ;;  %v159_v57 = vpop.f32.mrb[1].mxu0 }
 0x119   :  { %v160_v58 = vadd.f32 %v159_v57, %v74_v53  ;;  %v793_v59 = vpop.f32.mrb[2].mxu0 }
 0x11a   :  { %v175_v61 = vmin.f32 %v168_v56, 20.0  ;;  %v162_v62 = vpop.f32.mrb[3].mxu0 }
 0x11b   :  { %v163_v63 = vadd.f32 %v162_v62, %v79_v60  ;;  %v173_v1 = vmin.f32 %v160_v58, 20.0 }
 0x11c   :  { %v177_v0 = vpack.c.bf16 %v175_v61, %v175_v61 }
 0x11d   :  { %v174_v2 = vmin.f32 %v163_v63, 20.0 }
 0x11e   :  { %v182_v3 = vmul.bf16 1069105081, %v177_v0 }
 0x11f   :  { %v176_v4 = vpack.c.bf16 %v174_v2, %v173_v1 }
 0x120   :  { %859 = vpow.bf16 %v182_v3 }
 0x121   :  { %v179_v5 = vmul.bf16 1069105081, %v176_v4 }
 0x123   :  { %861 = vpow.bf16 %v179_v5 }
 0x12b   :  { %v860_v6 = vpop.eup %859 }
 0x12c   :  { %v186_v7 = vunpack.c.l.bf16 %v860_v6 }
 0x12e   :  { %v862_v8 = vpop.eup %861  ;;  %v189_v9 = vadd.f32 1.0, %v186_v7 }
 0x12f   :  { %v185_v10 = vunpack.c.h.bf16 %v862_v8  ;;  %v184_v11 = vunpack.c.l.bf16 %v862_v8 }
 0x130   :  { %v192_v12 = vmul.f32 %v189_v9, %v189_v9 }
 0x131   :  { %v188_v13 = vadd.f32 1.0, %v185_v10  ;;  %v187_v14 = vadd.f32 1.0, %v184_v11 }
 0x132   :  { %v201_v15 = vadd.f32 1.0, %v192_v12  ;;  %v719_v24 = vadd.f32 -1.0, %v192_v12 }
 0x133   :  { %v191_v16 = vmul.f32 %v188_v13, %v188_v13  ;;  %v190_v17 = vmul.f32 %v187_v14, %v187_v14 }
 0x134   :  { %863 = vrcp.f32 %v201_v15  ;;  %v198_v26 = vmul.f32 %v719_v24, %v168_v56  ;;  %v240_v56 = vpop.permute.xlu0 %239 }
 0x135   :  { %v718_v18 = vadd.f32 -1.0, %v191_v16  ;;  %v200_v19 = vadd.f32 1.0, %v191_v16  ;;  %v717_v20 = vadd.f32 -1.0, %v190_v17  ;;  %v199_v21 = vadd.f32 1.0, %v190_v17 }
 0x137   :  { %v197_v22 = vmul.f32 %v718_v18, %v163_v63  ;;  %865 = vrcp.f32 %v200_v19  ;;  %v196_v23 = vmul.f32 %v717_v20, %v160_v58  ;;  %v245_v63 = vpop.permute.xlu1 %244 }
 0x138   :  { %867 = vrcp.f32 %v199_v21  ;;  %v250_v4 = vpop.permute.xlu0 %249 }
 0x13e   :  { %v864_v25 = vpop.eup %863 }
 0x13f   :  { %v207_v30 = vmul.f32 %v864_v25, %v198_v26 }
 0x141   :  { %v866_v27 = vpop.eup %865  ;;  %v215_v33 = vpack.c.bf16 %v207_v30, %v207_v30 }
 0x142   :  { %v868_v28 = vpop.eup %867  ;;  %v206_v29 = vmul.f32 %v866_v27, %v197_v22 }
 0x143   :  { %v205_v31 = vmul.f32 %v868_v28, %v196_v23  ;;  %v279_v34 = vsel %vm277_vm2, %v215_v33, 0 }
 0x145   :  { %v214_v32 = vpack.c.bf16 %v206_v29, %v205_v31 }
 0x147   :  { %795 = vmatpush3.bf16.msra.mxu1 %v214_v32 }
 0x148   :  { %796 = vmatprep.subr.bf16.mxu1 %v908_v52 }
 0x14b   :  { %797 = vmatpush3.bf16.msra.mxu1 %v279_v34 }
 0x14e   :  { %799 = vmatmul.mubr.msk.bf16.vlgmr.msra.gmra.mrb[0].mxu1 %vm267_vm3, %v852_v35 }
 0x14f   :  { %802 = vmatprep.mubr.msk.bf16.mxu1 %vm909_vm1, %v908_v52 }
 0x156   :  { %803 = vmatmul.mubr.msk.bf16.gmra.mrb[4].mxu1 %vm267_vm3, %v853_v36 }
 0x157   :  { %806 = vmatprep.mubr.msk.bf16.mxu1 %vm909_vm1, %v908_v52 }
 0x15e   :  { %807 = vmatmul.mubr.msk.bf16.gmra.mrb[8].mxu1 %vm267_vm3, %v854_v37 }
 0x15f   :  { %816 = vmatprep.mubr.msk.bf16.mxu1 %vm436_vm4, %v855_v38 }
 0x221   :  { %v315_v40 = vpop.f32.mrb[0].mxu1 }
 0x222   :  { %v316_v41 = vadd.f32 %v315_v40, %v225_v39  ;;  %v800_v42 = vpop.f32.mrb[1].mxu1 }
 0x223   :  { %v318_v44 = vpop.f32.mrb[2].mxu1 }
 0x224   :  { %v319_v45 = vadd.f32 %v318_v44, %v230_v43  ;;  %v801_v46 = vpop.f32.mrb[3].mxu1  ;;  %v338_v47 = vmin.f32 %v316_v41, 20.0 }
 0x226   :  { %v339_v48 = vmin.f32 %v319_v45, 20.0 }
 0x228   :  { %v344_v49 = vpack.c.bf16 %v339_v48, %v338_v47 }
 0x229   :  { %v323_v51 = vpop.f32.mrb[4].mxu1 }
 0x22a   :  { %v348_v53 = vmul.bf16 1069105081, %v344_v49  ;;  %v324_v54 = vadd.f32 %v323_v51, %v235_v50  ;;  %v804_v55 = vpop.f32.mrb[5].mxu1 }
 0x22b   :  { %v326_v57 = vpop.f32.mrb[6].mxu1 }
 0x22c   :  { %869 = vpow.bf16 %v348_v53  ;;  %v327_v58 = vadd.f32 %v326_v57, %v240_v56  ;;  %v805_v59 = vpop.f32.mrb[7].mxu1  ;;  %v340_v60 = vmin.f32 %v324_v54, 20.0 }
 0x22e   :  { %v341_v61 = vmin.f32 %v327_v58, 20.0 }
 0x230   :  { %v345_v62 = vpack.c.bf16 %v341_v61, %v340_v60 }
 0x231   :  { %v331_v0 = vpop.f32.mrb[8].mxu1 }
 0x232   :  { %v351_v1 = vmul.bf16 1069105081, %v345_v62  ;;  %v332_v2 = vadd.f32 %v331_v0, %v245_v63  ;;  %v808_v3 = vpop.f32.mrb[9].mxu1 }
 0x233   :  { %v334_v5 = vpop.f32.mrb[10].mxu1 }
 0x234   :  { %871 = vpow.bf16 %v351_v1  ;;  %v335_v6 = vadd.f32 %v334_v5, %v250_v4  ;;  %v809_v7 = vpop.f32.mrb[11].mxu1  ;;  %v342_v8 = vmin.f32 %v332_v2, 20.0  ;;  %v856_v4 = vld [vmem:[%s1149_s5 + $0x8] ss:$0 sps:$4 sm:$0xff]   ;;  %v416_v5 = vpop.permute.xlu1 %415 }
 0x236   :  { %v343_v9 = vmin.f32 %v335_v6, 20.0 }
 0x237   :  { %v870_v10 = vpop.eup %869 }
 0x238   :  { %v357_v11 = vunpack.c.h.bf16 %v870_v10  ;;  %v346_v12 = vpack.c.bf16 %v343_v9, %v342_v8  ;;  %v356_v13 = vunpack.c.l.bf16 %v870_v10 }
 0x23a   :  { %v363_v14 = vadd.f32 1.0, %v357_v11  ;;  %v354_v15 = vmul.bf16 1069105081, %v346_v12  ;;  %v362_v16 = vadd.f32 1.0, %v356_v13  ;;  %v421_v12 = vpop.permute.xlu0 %420 }
 0x23c   :  { %v369_v17 = vmul.f32 %v363_v14, %v363_v14  ;;  %873 = vpow.bf16 %v354_v15  ;;  %v368_v18 = vmul.f32 %v362_v16, %v362_v16 }
 0x23e   :  { %v727_v19 = vadd.f32 -1.0, %v369_v17  ;;  %v387_v20 = vadd.f32 1.0, %v369_v17  ;;  %v726_v21 = vadd.f32 -1.0, %v368_v18  ;;  %v386_v22 = vadd.f32 1.0, %v368_v18 }
 0x23f   :  { %v872_v23 = vpop.eup %871 }
 0x240   :  { %v381_v24 = vmul.f32 %v727_v19, %v319_v45  ;;  %875 = vrcp.f32 %v387_v20  ;;  %v359_v25 = vunpack.c.h.bf16 %v872_v23  ;;  %v380_v26 = vmul.f32 %v726_v21, %v316_v41 }
 0x241   :  { %877 = vrcp.f32 %v386_v22  ;;  %v358_v27 = vunpack.c.l.bf16 %v872_v23 }
 0x242   :  { %v365_v28 = vadd.f32 1.0, %v359_v25 }
 0x243   :  { %v364_v29 = vadd.f32 1.0, %v358_v27 }
 0x244   :  { %v371_v30 = vmul.f32 %v365_v28, %v365_v28 }
 0x245   :  { %v370_v31 = vmul.f32 %v364_v29, %v364_v29 }
 0x246   :  { %v729_v32 = vadd.f32 -1.0, %v371_v30  ;;  %v389_v33 = vadd.f32 1.0, %v371_v30 }
 0x247   :  { %v874_v34 = vpop.eup %873  ;;  %v728_v35 = vadd.f32 -1.0, %v370_v31  ;;  %v388_v36 = vadd.f32 1.0, %v370_v31 }
 0x248   :  { %v383_v37 = vmul.f32 %v729_v32, %v327_v58  ;;  %879 = vrcp.f32 %v389_v33  ;;  %v361_v38 = vunpack.c.h.bf16 %v874_v34  ;;  %v360_v39 = vunpack.c.l.bf16 %v874_v34 }
 0x249   :  { %v382_v40 = vmul.f32 %v728_v35, %v324_v54  ;;  %881 = vrcp.f32 %v388_v36 }
 0x24a   :  { %v876_v42 = vpop.eup %875  ;;  %v367_v43 = vadd.f32 1.0, %v361_v38  ;;  %v366_v41 = vadd.f32 1.0, %v360_v39 }
 0x24b   :  { %v878_v44 = vpop.eup %877  ;;  %v399_v45 = vmul.f32 %v876_v42, %v381_v24 }
 0x24c   :  { %v373_v46 = vmul.f32 %v367_v43, %v367_v43  ;;  %v398_v47 = vmul.f32 %v878_v44, %v380_v26  ;;  %v372_v48 = vmul.f32 %v366_v41, %v366_v41 }
 0x24e   :  { %v731_v49 = vadd.f32 -1.0, %v373_v46  ;;  %v391_v50 = vadd.f32 1.0, %v373_v46  ;;  %v407_v51 = vpack.c.bf16 %v399_v45, %v398_v47  ;;  %v730_v53 = vadd.f32 -1.0, %v372_v48 }
 0x24f   :  { %v390_v55 = vadd.f32 1.0, %v372_v48 }
 0x250   :  { %v385_v56 = vmul.f32 %v731_v49, %v335_v6  ;;  %883 = vrcp.f32 %v391_v50  ;;  %810 = vmatprep.subr.bf16.mxu1 %v407_v51  ;;  %v384_v57 = vmul.f32 %v730_v53, %v332_v2  ;;  %v857_v2 = vld [vmem:[%s1150_s7] sm:$0xff]   ;;  %v426_v6 = vpop.permute.xlu1 %425  ;;  %v537_v53 = vpop.permute.xlu0 %536 }
 0x251   :  { %811 = vmatpush3.bf16.msra.mxu1 %v407_v51  ;;  %885 = vrcp.f32 %v390_v55  ;;  %v858_v51 = vld [vmem:[%s1150_s7 + $0x8] ss:$0 sps:$4 sm:$0xff]  }
 0x252   :  { %v880_v54 = vpop.eup %879 }
 0x253   :  { %v882_v58 = vpop.eup %881  ;;  %v401_v59 = vmul.f32 %v880_v54, %v383_v37 }
 0x254   :  { %v400_v60 = vmul.f32 %v882_v58, %v382_v40  ;;  %v547_v55 = vpop.permute.xlu0 %546 }
 0x256   :  { %v408_v61 = vpack.c.bf16 %v401_v59, %v400_v60  ;;  %v542_v60 = vpop.permute.xlu1 %541 }
 0x258   :  { %812 = vmatprep.subr.bf16.mxu1 %v408_v61 }
 0x259   :  { %813 = vmatpush3.bf16.msra.mxu1 %v408_v61 }
 0x25a   :  { %v884_v62 = vpop.eup %883 }
 0x25b   :  { %v886_v63 = vpop.eup %885  ;;  %v403_v0 = vmul.f32 %v884_v62, %v385_v56 }
 0x25c   :  { %v402_v1 = vmul.f32 %v886_v63, %v384_v57 }
 0x25e   :  { %v409_v3 = vpack.c.bf16 %v403_v0, %v402_v1 }
 0x260   :  { %814 = vmatprep.subr.bf16.mxu1 %v409_v3 }
 0x261   :  { %815 = vmatpush3.bf16.msra.mxu1 %v409_v3 }
 0x264   :  { %817 = vmatmul.mubr.msk.bf16.vlgmr.msra.gmra.mrb[12].mxu1 %vm436_vm4, %v856_v4 }
 0x265   :  { %824 = vmatprep.mubr.msk.bf16.mxu1 %vm267_vm3, %v857_v2 }
 0x337   :  { %v818_v7 = vpop.f32.mrb[12].mxu1 }
 0x338   :  { %v486_v8 = vadd.f32 %v818_v7, %v426_v6  ;;  %v477_v9 = vpop.f32.mrb[13].mxu1 }
 0x339   :  { %v478_v10 = vadd.f32 %v477_v9, %v416_v5  ;;  %v819_v11 = vpop.f32.mrb[14].mxu1 }
 0x33a   :  { %v493_v13 = vmin.f32 %v486_v8, 20.0  ;;  %v480_v14 = vpop.f32.mrb[15].mxu1 }
 0x33b   :  { %v481_v15 = vadd.f32 %v480_v14, %v421_v12  ;;  %v491_v17 = vmin.f32 %v478_v10, 20.0 }
 0x33c   :  { %v495_v16 = vpack.c.bf16 %v493_v13, %v493_v13 }
 0x33d   :  { %v492_v18 = vmin.f32 %v481_v15, 20.0 }
 0x33e   :  { %v500_v19 = vmul.bf16 1069105081, %v495_v16 }
 0x33f   :  { %v494_v20 = vpack.c.bf16 %v492_v18, %v491_v17 }
 0x340   :  { %887 = vpow.bf16 %v500_v19 }
 0x341   :  { %v497_v21 = vmul.bf16 1069105081, %v494_v20 }
 0x343   :  { %889 = vpow.bf16 %v497_v21 }
 0x34b   :  { %v888_v22 = vpop.eup %887 }
 0x34c   :  { %v504_v23 = vunpack.c.l.bf16 %v888_v22 }
 0x34e   :  { %v890_v24 = vpop.eup %889  ;;  %v507_v25 = vadd.f32 1.0, %v504_v23 }
 0x34f   :  { %v503_v26 = vunpack.c.h.bf16 %v890_v24  ;;  %v502_v27 = vunpack.c.l.bf16 %v890_v24 }
 0x350   :  { %v510_v28 = vmul.f32 %v507_v25, %v507_v25 }
 0x351   :  { %v506_v29 = vadd.f32 1.0, %v503_v26  ;;  %v505_v30 = vadd.f32 1.0, %v502_v27 }
 0x352   :  { %v519_v31 = vadd.f32 1.0, %v510_v28  ;;  %v738_v40 = vadd.f32 -1.0, %v510_v28 }
 0x353   :  { %v509_v32 = vmul.f32 %v506_v29, %v506_v29  ;;  %v508_v33 = vmul.f32 %v505_v30, %v505_v30 }
 0x354   :  { %891 = vrcp.f32 %v519_v31  ;;  %v516_v41 = vmul.f32 %v738_v40, %v486_v8 }
 0x355   :  { %v737_v34 = vadd.f32 -1.0, %v509_v32  ;;  %v518_v35 = vadd.f32 1.0, %v509_v32  ;;  %v736_v36 = vadd.f32 -1.0, %v508_v33  ;;  %v517_v37 = vadd.f32 1.0, %v508_v33 }
 0x357   :  { %v515_v38 = vmul.f32 %v737_v34, %v481_v15  ;;  %893 = vrcp.f32 %v518_v35  ;;  %v514_v39 = vmul.f32 %v736_v36, %v478_v10  ;;  %v649_v35 = vld [vmem:[%s1151_s9] sm:$0x1]  ;;  %v658_v36 = vlaneseq }
 0x358   :  { %895 = vrcp.f32 %v517_v37 }
 0x359   :  { %v659_v37 = vshrl.u32 %v658_v36, 7 }
 0x35e   :  { %v892_v42 = vpop.eup %891 }
 0x35f   :  { %v525_v46 = vmul.f32 %v892_v42, %v516_v41 }
 0x361   :  { %v894_v43 = vpop.eup %893  ;;  %v530_v49 = vpack.c.bf16 %v525_v46, %v525_v46 }
 0x362   :  { %v896_v44 = vpop.eup %895  ;;  %v524_v45 = vmul.f32 %v894_v43, %v515_v38  ;;  %v660_v38 = vsub.s32 0, %v659_v37 }
 0x363   :  { %v523_v47 = vmul.f32 %v896_v44, %v514_v39  ;;  %v564_v50 = vsel %vm277_vm2, %v530_v49, 0  ;;  %v656_v39 = vpop.permute.xlu1 %655 }
 0x364   :  { %v661_v40 = vrot.slane %v656_v39, %v660_v38 }
 0x365   :  { %v529_v48 = vpack.c.bf16 %v524_v45, %v523_v47 }
 0x367   :  { %820 = vmatprep.subr.bf16.mxu1 %v529_v48 }
 0x368   :  { %821 = vmatpush3.bf16.msra.mxu1 %v529_v48 }
 0x369   :  { %844 = vmatprep.subr.msk.bf16.mxu1 %vm277_vm2, %v530_v49 }
 0x36c   :  { %823 = vmatpush3.bf16.msra.mxu1 %v564_v50 }
 0x36d   :  { %828 = vmatprep.subr.bf16.mxu1 %v908_v52 }
 0x36f   :  { %825 = vmatmul.mubr.msk.bf16.vlgmr.msra.gmra.mrb[16].mxu1 %vm267_vm3, %v858_v51 }
 0x370   :  { %832 = vmatprep.mubr.msk.bf16.mxu1 %vm909_vm1, %v908_v52 }
 0x442   :  { %v826_v56 = vpop.f32.mrb[16].mxu1 }
 0x443   :  { %v609_v57 = vadd.f32 %v826_v56, %v547_v55  ;;  %v600_v54 = vpop.f32.mrb[17].mxu1 }
 0x444   :  { %v601_v58 = vadd.f32 %v600_v54, %v537_v53  ;;  %v827_v59 = vpop.f32.mrb[18].mxu1 }
 0x445   :  { %v616_v61 = vmin.f32 %v609_v57, 20.0  ;;  %v603_v62 = vpop.f32.mrb[19].mxu1 }
 0x446   :  { %v604_v63 = vadd.f32 %v603_v62, %v542_v60  ;;  %v614_v1 = vmin.f32 %v601_v58, 20.0 }
 0x447   :  { %v618_v0 = vpack.c.bf16 %v616_v61, %v616_v61 }
 0x448   :  { %v615_v3 = vmin.f32 %v604_v63, 20.0 }
 0x449   :  { %v623_v4 = vmul.bf16 1069105081, %v618_v0 }
 0x44a   :  { %v617_v2 = vpack.c.bf16 %v615_v3, %v614_v1 }
 0x44b   :  { %897 = vpow.bf16 %v623_v4 }
 0x44c   :  { %v620_v5 = vmul.bf16 1069105081, %v617_v2 }
 0x44e   :  { %899 = vpow.bf16 %v620_v5 }
 0x456   :  { %v898_v6 = vpop.eup %897 }
 0x457   :  { %v627_v7 = vunpack.c.l.bf16 %v898_v6 }
 0x459   :  { %v900_v8 = vpop.eup %899  ;;  %v630_v9 = vadd.f32 1.0, %v627_v7 }
 0x45a   :  { %v625_v10 = vunpack.c.l.bf16 %v900_v8  ;;  %v626_v11 = vunpack.c.h.bf16 %v900_v8 }
 0x45b   :  { %v633_v12 = vmul.f32 %v630_v9, %v630_v9 }
 0x45c   :  { %v628_v13 = vadd.f32 1.0, %v625_v10  ;;  %v629_v14 = vadd.f32 1.0, %v626_v11 }
 0x45d   :  { %v642_v15 = vadd.f32 1.0, %v633_v12  ;;  %v745_v24 = vadd.f32 -1.0, %v633_v12 }
 0x45e   :  { %v631_v16 = vmul.f32 %v628_v13, %v628_v13  ;;  %v632_v17 = vmul.f32 %v629_v14, %v629_v14 }
 0x45f   :  { %901 = vrcp.f32 %v642_v15  ;;  %v639_v26 = vmul.f32 %v745_v24, %v609_v57 }
 0x460   :  { %v743_v18 = vadd.f32 -1.0, %v631_v16  ;;  %v744_v19 = vadd.f32 -1.0, %v632_v17  ;;  %v640_v20 = vadd.f32 1.0, %v631_v16  ;;  %v641_v21 = vadd.f32 1.0, %v632_v17 }
 0x462   :  { %v637_v22 = vmul.f32 %v743_v18, %v601_v58  ;;  %v638_v23 = vmul.f32 %v744_v19, %v604_v63  ;;  %903 = vrcp.f32 %v640_v20 }
 0x463   :  { %905 = vrcp.f32 %v641_v21 }
 0x469   :  { %v902_v25 = vpop.eup %901 }
 0x46a   :  { %v648_v29 = vmul.f32 %v902_v25, %v639_v26 }
 0x46c   :  { %v904_v27 = vpop.eup %903  ;;  %v651_v33 = vpack.c.bf16 %v648_v29, %v648_v29 }
 0x46d   :  { %v906_v28 = vpop.eup %905  ;;  %v646_v30 = vmul.f32 %v904_v27, %v637_v22 }
 0x46e   :  { %v647_v31 = vmul.f32 %v906_v28, %v638_v23  ;;  %v666_v34 = vsel %vm277_vm2, %v651_v33, 0 }
 0x470   :  { %v650_v32 = vpack.c.bf16 %v647_v31, %v646_v30 }
 0x472   :  { %829 = vmatpush3.bf16.msra.mxu1 %v650_v32 }
 0x473   :  { %830 = vmatprep.subr.bf16.mxu1 %v908_v52 }
 0x476   :  { %831 = vmatpush3.bf16.msra.mxu1 %v666_v34 }
 0x479   :  { %833 = vmatmul.mubr.msk.bf16.vlgmr.msra.gmra.mrb[20].mxu1 %vm267_vm3, %v649_v35 }
 0x54c   :  { %v702_v42 = vpop.f32.mrb[20].mxu1 }
 0x54d   :  { %v703_v43 = vadd.f32 %v702_v42, %v661_v40  ;;  %v834_v41 = vpop.f32.mrb[21].mxu1 }
 0x54e   :  { %v705_v44 = vpop.f32.mrb[22].mxu1 }
 0x54f   :  { %708 = vst [vmem:[%s1152_s11] sm:$0x1] %v703_v43  ;;  %v835_v52 = vpop.f32.mrb[23].mxu1 }

</bundles_post_ra>
